<compile_context>
chip_gen: v5e
topology: v5e:2x2
jax: 0.10.0
libtpu: 0.0.40
codegen_flags: <defaults>
</compile_context>

<pallas_src>
import functools

import jax
import jax.numpy as jnp
from jax.experimental import pallas as pl
from jax.experimental.pallas import tpu as pltpu


def _round_up(a, b):
    return -(-a // b) * b


def _adjust_kernel_mxu(x_ref, w_ref, scale_ref, shift_ref, o_ref, *, nb):
    # x_ref: (Nb, Cin, TM), w_ref: (Cout, Cin), scale/shift: (Cout, 1), o_ref: (Nb, Cout, TM)
    w = w_ref[...]
    scale = scale_ref[...]
    shift = shift_ref[...]
    for b in range(nb):                                  # static unroll; nb is small (<= 8)
        y = jnp.dot(w, x_ref[b], preferred_element_type=jnp.float32)
        o_ref[b] = (y * scale + shift).astype(o_ref.dtype)


def _adjust_kernel_vpu(x_ref, w_ref, scale_ref, shift_ref, o_ref, *, nb, cin):
    # Tiny-channel path (Cin <= 8 and Cout <= 16): K is too small to be worth the MXU; do
    # cin broadcast-FMAs on the VPU.  The (Cout, TM) f32 accumulator stays <= 64 KiB.
    # x_ref: (Nb, Cin, TM), w_ref: (Cin, Cout, 1), scale/shift: (Cout, 1), o_ref: (Nb, Cout, TM)
    scale = scale_ref[...]
    shift = shift_ref[...]
    for b in range(nb):                                  # static unroll
        x = x_ref[b].astype(jnp.float32)                 # (Cin, TM)
        acc = jnp.zeros(o_ref.shape[1:], jnp.float32)    # (Cout, TM)
        for ci in range(cin):                            # static unroll; cin tiny here
            acc = acc + w_ref[ci].astype(jnp.float32) * x[ci:ci + 1, :]
        o_ref[b] = (acc * scale + shift).astype(o_ref.dtype)


def adjust_layer(x_nchw, conv_w, gamma, beta, running_mean, running_var,
                 eps=1e-5, tile_m=1024, vmem_budget_bytes=16 * 1024 * 1024):
    """x_nchw: (N, Cin, H, W); conv_w: (Cout, Cin, 1, 1) -> returns (N, Cout, H, W)."""
    N, Cin, H, W = x_nchw.shape
    Cout = conv_w.shape[0]
    M = H * W
    dt = x_nchw.dtype
    itemsize = jnp.dtype(dt).itemsize

    # Eval-mode BN as a per-output-channel affine applied to the f32 conv result.
    inv = (gamma / jnp.sqrt(running_var + eps)).astype(jnp.float32)
    scale = inv.reshape(Cout, 1)
    shift = (beta - running_mean * inv).reshape(Cout, 1).astype(jnp.float32)
    w_mat = conv_w.reshape(Cout, Cin)

    # --- VMEM footprint model (bytes/lane-column + fixed), used for tile sizing AND limit.
    per_col = (2 * Cin + 2 * Cout) * itemsize + Cout * 4   # x(x2), out(x2), f32 dot result
    fixed = 2 * Cout * Cin * itemsize + 4 * Cout * 4       # weight(x2) + scale/shift(x2)
    cap_cols = max(128, ((vmem_budget_bytes - fixed) // per_col) // 128 * 128)

    # Lane (last-axis) tile: multiple of 128, or the full M when M < 128.
    tile_m = max(128, (tile_m // 128) * 128)
    if M < 128:
        lane_block = M
    else:
        lane_block = min(_round_up(M, 128), tile_m, cap_cols)
    m_steps = pl.cdiv(M, lane_block)

    # Pack several batch images per grid step when the whole feature map fits in one tile,
    # but keep >= 2 grid steps when N > 1 (v7x megacore).
    nb = 1
    if m_steps == 1 and N > 1:
        cols_per_img = max(128, _round_up(M, 128))
        max_nb = min(N, max(1, cap_cols // cols_per_img), 8)
        if max_nb >= N:
            max_nb = max(1, N // 2)
        for cand in range(max_nb, 0, -1):                 # largest divisor of N -> exact blocks
            if N % cand == 0:
                nb = cand
                break

    # N == 1 and a single large lane tile -> split it so the grid has >= 2 parallel steps.
    if N == 1 and m_steps == 1 and lane_block >= 1024:
        lane_block = max(512, _round_up(lane_block // 2, 128))
        m_steps = pl.cdiv(M, lane_block)

    footprint = fixed + per_col * nb * max(128, _round_up(lane_block, 128))
    vmem_limit = int(min(64 * 1024 * 1024, max(32 * 1024 * 1024, footprint + 8 * 1024 * 1024)))

    use_vpu = (Cin <= 8) and (Cout <= 16)
    if use_vpu:
        kernel = functools.partial(_adjust_kernel_vpu, nb=nb, cin=Cin)
        w_arr = w_mat.astype(jnp.float32).T.reshape(Cin, Cout, 1)      # (Cin, Cout, 1) f32
        w_spec = pl.BlockSpec((Cin, Cout, 1), lambda n, m: (0, 0, 0))
    else:
        kernel = functools.partial(_adjust_kernel_mxu, nb=nb)
        w_arr = w_mat.astype(dt)                                       # (Cout, Cin)
        w_spec = pl.BlockSpec((Cout, Cin), lambda n, m: (0, 0))

    x = x_nchw.reshape(N, Cin, M)                                      # contiguous -> free reshape

    out = pl.pallas_call(
        kernel,
        out_shape=jax.ShapeDtypeStruct((N, Cout, M), dt),
        grid_spec=pltpu.PrefetchScalarGridSpec(
            num_scalar_prefetch=0,
            grid=(N // nb, m_steps),
            in_specs=[
                pl.BlockSpec((nb, Cin, lane_block), lambda n, m: (n, 0, m)),   # x (lane-dense)
                w_spec,                                                        # weight
                pl.BlockSpec((Cout, 1), lambda n, m: (0, 0)),                  # BN scale
                pl.BlockSpec((Cout, 1), lambda n, m: (0, 0)),                  # BN shift
            ],
            out_specs=pl.BlockSpec((nb, Cout, lane_block), lambda n, m: (n, 0, m)),
        ),
        compiler_params=pltpu.CompilerParams(
            dimension_semantics=("parallel", "parallel"),
            vmem_limit_bytes=vmem_limit,
        ),
    )(x, w_arr, scale, shift)

    return out.reshape(N, Cout, H, W)


def adjust_layer_ref(x_nchw, conv_w, gamma, beta, running_mean, running_var, eps=1e-5):
    # pure-JAX reference (eval-mode BN)
    y = jax.lax.conv_general_dilated(
        x_nchw, conv_w, window_strides=(1, 1), padding="VALID",
        dimension_numbers=("NCHW", "OIHW", "NCHW"))
    inv = gamma / jnp.sqrt(running_var + eps)
    return y * inv[None, :, None, None] + (beta - running_mean * inv)[None, :, None, None]


if __name__ == "__main__":
    key = jax.random.PRNGKey(0)
    ks = jax.random.split(key, 18)

    # --- small test (module-consistent shapes, f32, VPU tiny-channel path) ---
    N, Cin, H, W = 2, 4, 16, 16
    Cout = 8
    x = jax.random.normal(ks[0], (N, Cin, H, W), dtype=jnp.float32)
    conv_w = jax.random.normal(ks[1], (Cout, Cin, 1, 1), dtype=jnp.float32) * 0.5
    gamma = 1.0 + 0.1 * jax.random.normal(ks[2], (Cout,), dtype=jnp.float32)
    beta = 0.1 * jax.random.normal(ks[3], (Cout,), dtype=jnp.float32)
    running_mean = 0.1 * jax.random.normal(ks[4], (Cout,), dtype=jnp.float32)
    running_var = jnp.abs(1.0 + 0.1 * jax.random.normal(ks[5], (Cout,), dtype=jnp.float32))

    out = jax.block_until_ready(adjust_layer(x, conv_w, gamma, beta, running_mean, running_var))
    ref = adjust_layer_ref(x, conv_w, gamma, beta, running_mean, running_var)
    assert out.shape == (N, Cout, H, W)
    assert jnp.allclose(out, ref, atol=1e-4, rtol=1e-4)

    # --- larger-channel bf16 test (MXU path, M=64 < 128 -> full-dim lane block) ---
    N2, Cin2, H2, W2, Cout2 = 1, 128, 8, 8, 128
    x2 = jax.random.normal(ks[6], (N2, Cin2, H2, W2), dtype=jnp.float32).astype(jnp.bfloat16)
    w2 = 0.1 * jax.random.normal(ks[7], (Cout2, Cin2, 1, 1), dtype=jnp.float32)
    g2 = 1.0 + 0.1 * jax.random.normal(ks[8], (Cout2,), dtype=jnp.float32)
    b2 = 0.1 * jax.random.normal(ks[9], (Cout2,), dtype=jnp.float32)
    m2 = 0.1 * jax.random.normal(ks[10], (Cout2,), dtype=jnp.float32)
    v2 = jnp.abs(1.0 + 0.1 * jax.random.normal(ks[11], (Cout2,), dtype=jnp.float32))

    out2 = jax.block_until_ready(adjust_layer(x2, w2, g2, b2, m2, v2))
    ref2 = adjust_layer_ref(x2.astype(jnp.float32), w2, g2, b2, m2, v2)
    assert out2.shape == (N2, Cout2, H2, W2)
    assert jnp.allclose(out2.astype(jnp.float32), ref2, atol=5e-2, rtol=5e-2)

    # --- ragged-M test (H*W=225 not a multiple of 128; masked last block, no pad/slice) ---
    N3, Cin3, H3, W3, Cout3 = 2, 32, 15, 15, 64
    x3 = jax.random.normal(ks[12], (N3, Cin3, H3, W3), dtype=jnp.float32)
    w3 = 0.1 * jax.random.normal(ks[13], (Cout3, Cin3, 1, 1), dtype=jnp.float32)
    g3 = 1.0 + 0.1 * jax.random.normal(ks[14], (Cout3,), dtype=jnp.float32)
    b3 = 0.1 * jax.random.normal(ks[15], (Cout3,), dtype=jnp.float32)
    m3 = 0.1 * jax.random.normal(ks[16], (Cout3,), dtype=jnp.float32)
    v3 = jnp.abs(1.0 + 0.1 * jax.random.normal(ks[17], (Cout3,), dtype=jnp.float32))

    out3 = jax.block_until_ready(adjust_layer(x3, w3, g3, b3, m3, v3))
    ref3 = adjust_layer_ref(x3, w3, g3, b3, m3, v3)
    assert out3.shape == (N3, Cout3, H3, W3)
    assert jnp.allclose(out3, ref3, atol=2e-2, rtol=2e-2)

    print("KERNEL_OK")
</pallas_src>

<mosaic_0001>
module attributes {stable_mosaic.version = 11 : i64} {
  func.func @_adjust_kernel_vpu(%arg0: i32, %arg1: i32, %arg2: memref<1x4x256xf32, #tpu.memory_space<vmem>>, %arg3: memref<4x8x1xf32, #tpu.memory_space<vmem>>, %arg4: memref<8x1xf32, #tpu.memory_space<vmem>>, %arg5: memref<8x1xf32, #tpu.memory_space<vmem>>, %arg6: memref<1x8x256xf32, #tpu.memory_space<vmem>>) attributes {dimension_semantics = [#tpu.dimension_semantics<parallel>, #tpu.dimension_semantics<parallel>], iteration_bounds = array<i64: 2, 1>, scalar_prefetch = 0 : i64, scratch_operands = 0 : i64, tpu.core_type = #tpu.core_type<tc>, window_params = [{transform_indices = @transform_0, window_bounds = array<i64: 1, 4, 256>}, {pipeline_mode = #tpu.pipeline_mode<synchronous>, transform_indices = @transform_1, window_bounds = array<i64: 4, 8, 1>}, {pipeline_mode = #tpu.pipeline_mode<synchronous>, transform_indices = @transform_2, window_bounds = array<i64: 8, 1>}, {pipeline_mode = #tpu.pipeline_mode<synchronous>, transform_indices = @transform_3, window_bounds = array<i64: 8, 1>}, {transform_indices = @transform_4, window_bounds = array<i64: 1, 8, 256>}]} {
    %c0 = arith.constant 0 : index
    %c0_0 = arith.constant 0 : index
    %0 = vector.load %arg4[%c0, %c0_0] : memref<8x1xf32, #tpu.memory_space<vmem>>, vector<8x1xf32>
    %c0_1 = arith.constant 0 : index
    %c0_2 = arith.constant 0 : index
    %1 = vector.load %arg5[%c0_1, %c0_2] : memref<8x1xf32, #tpu.memory_space<vmem>>, vector<8x1xf32>
    %c0_3 = arith.constant 0 : index
    %c0_4 = arith.constant 0 : index
    %c0_5 = arith.constant 0 : index
    %2 = vector.load %arg2[%c0_3, %c0_4, %c0_5] : memref<1x4x256xf32, #tpu.memory_space<vmem>>, vector<1x4x256xf32>
    %3 = vector.shape_cast %2 : vector<1x4x256xf32> to vector<4x256xf32>
    %cst = arith.constant 0.000000e+00 : f32
    %4 = vector.broadcast %cst : f32 to vector<8x256xf32>
    %c0_6 = arith.constant 0 : index
    %c0_7 = arith.constant 0 : index
    %c0_8 = arith.constant 0 : index
    %5 = vector.load %arg3[%c0_6, %c0_7, %c0_8] : memref<4x8x1xf32, #tpu.memory_space<vmem>>, vector<1x8x1xf32>
    %6 = vector.shape_cast %5 : vector<1x8x1xf32> to vector<8x1xf32>
    %7 = vector.extract_strided_slice %3 {offsets = [0, 0], sizes = [1, 256], strides = [1, 1]} : vector<4x256xf32> to vector<1x256xf32>
    %8 = vector.broadcast %6 : vector<8x1xf32> to vector<8x256xf32>
    %9 = vector.broadcast %7 : vector<1x256xf32> to vector<8x256xf32>
    %10 = arith.mulf %8, %9 : vector<8x256xf32>
    %11 = arith.addf %4, %10 : vector<8x256xf32>
    %c1 = arith.constant 1 : index
    %c0_9 = arith.constant 0 : index
    %c0_10 = arith.constant 0 : index
    %12 = vector.load %arg3[%c1, %c0_9, %c0_10] : memref<4x8x1xf32, #tpu.memory_space<vmem>>, vector<1x8x1xf32>
    %13 = vector.shape_cast %12 : vector<1x8x1xf32> to vector<8x1xf32>
    %14 = vector.extract_strided_slice %3 {offsets = [1, 0], sizes = [1, 256], strides = [1, 1]} : vector<4x256xf32> to vector<1x256xf32>
    %15 = vector.broadcast %13 : vector<8x1xf32> to vector<8x256xf32>
    %16 = vector.broadcast %14 : vector<1x256xf32> to vector<8x256xf32>
    %17 = arith.mulf %15, %16 : vector<8x256xf32>
    %18 = arith.addf %11, %17 : vector<8x256xf32>
    %c2 = arith.constant 2 : index
    %c0_11 = arith.constant 0 : index
    %c0_12 = arith.constant 0 : index
    %19 = vector.load %arg3[%c2, %c0_11, %c0_12] : memref<4x8x1xf32, #tpu.memory_space<vmem>>, vector<1x8x1xf32>
    %20 = vector.shape_cast %19 : vector<1x8x1xf32> to vector<8x1xf32>
    %21 = vector.extract_strided_slice %3 {offsets = [2, 0], sizes = [1, 256], strides = [1, 1]} : vector<4x256xf32> to vector<1x256xf32>
    %22 = vector.broadcast %20 : vector<8x1xf32> to vector<8x256xf32>
    %23 = vector.broadcast %21 : vector<1x256xf32> to vector<8x256xf32>
    %24 = arith.mulf %22, %23 : vector<8x256xf32>
    %25 = arith.addf %18, %24 : vector<8x256xf32>
    %c3 = arith.constant 3 : index
    %c0_13 = arith.constant 0 : index
    %c0_14 = arith.constant 0 : index
    %26 = vector.load %arg3[%c3, %c0_13, %c0_14] : memref<4x8x1xf32, #tpu.memory_space<vmem>>, vector<1x8x1xf32>
    %27 = vector.shape_cast %26 : vector<1x8x1xf32> to vector<8x1xf32>
    %28 = vector.extract_strided_slice %3 {offsets = [3, 0], sizes = [1, 256], strides = [1, 1]} : vector<4x256xf32> to vector<1x256xf32>
    %29 = vector.broadcast %27 : vector<8x1xf32> to vector<8x256xf32>
    %30 = vector.broadcast %28 : vector<1x256xf32> to vector<8x256xf32>
    %31 = arith.mulf %29, %30 : vector<8x256xf32>
    %32 = arith.addf %25, %31 : vector<8x256xf32>
    %33 = vector.broadcast %0 : vector<8x1xf32> to vector<8x256xf32>
    %34 = arith.mulf %32, %33 : vector<8x256xf32>
    %35 = vector.broadcast %1 : vector<8x1xf32> to vector<8x256xf32>
    %36 = arith.addf %34, %35 : vector<8x256xf32>
    %c0_15 = arith.constant 0 : index
    %c0_16 = arith.constant 0 : index
    %c0_17 = arith.constant 0 : index
    %37 = vector.load %arg6[%c0_15, %c0_16, %c0_17] : memref<1x8x256xf32, #tpu.memory_space<vmem>>, vector<1x8x256xf32>
    %38 = vector.shape_cast %37 : vector<1x8x256xf32> to vector<8x256xf32>
    %39 = vector.shape_cast %36 : vector<8x256xf32> to vector<1x8x256xf32>
    tpu.vector_store %arg6[%c0_15, %c0_16, %c0_17], %39 {strides = array<i32>} : memref<1x8x256xf32, #tpu.memory_space<vmem>>, vector<1x8x256xf32>,
    return
  }
  func.func @transform_0(%arg0: i32, %arg1: i32) -> (i32, i32, i32) {
    %c0_i32 = arith.constant 0 : i32
    %c0_i32_0 = arith.constant 0 : i32
    return %arg0, %c0_i32, %arg1 : i32, i32, i32
  }
  func.func @transform_1(%arg0: i32, %arg1: i32) -> (i32, i32, i32) {
    %c0_i32 = arith.constant 0 : i32
    %c0_i32_0 = arith.constant 0 : i32
    %c0_i32_1 = arith.constant 0 : i32
    %c0_i32_2 = arith.constant 0 : i32
    return %c0_i32, %c0_i32_0, %c0_i32_1 : i32, i32, i32
  }
  func.func @transform_2(%arg0: i32, %arg1: i32) -> (i32, i32) {
    %c0_i32 = arith.constant 0 : i32
    %c0_i32_0 = arith.constant 0 : i32
    %c0_i32_1 = arith.constant 0 : i32
    return %c0_i32, %c0_i32_0 : i32, i32
  }
  func.func @transform_3(%arg0: i32, %arg1: i32) -> (i32, i32) {
    %c0_i32 = arith.constant 0 : i32
    %c0_i32_0 = arith.constant 0 : i32
    %c0_i32_1 = arith.constant 0 : i32
    return %c0_i32, %c0_i32_0 : i32, i32
  }
  func.func @transform_4(%arg0: i32, %arg1: i32) -> (i32, i32, i32) {
    %c0_i32 = arith.constant 0 : i32
    %c0_i32_0 = arith.constant 0 : i32
    return %arg0, %c0_i32, %arg1 : i32, i32, i32
  }
}

</mosaic_0001>

<bundles_post_ra>
// kernel: tpu_custom_call.1
= control target key start
LH: loop header
LB: loop body
LE: loop exit
PB: predicated region body
PF: predicated region fallthrough
CT: control target
= control target key end

     0   :  { %9 = vsyncpa [#allocation3], 0  ;;  %s711_s0 = inlined_call_operand.vmem [shape: f32[2,4,256], index: 0, kind: input, shape index: {}]   ;;  %s712_s1 = inlined_call_operand.vmem [shape: f32[4,8,1], index: 1, kind: input, shape index: {}]   ;;  %s713_s2 = inlined_call_operand.vmem [shape: f32[8,1], index: 2, kind: input, shape index: {}]   ;;  %s714_s3 = inlined_call_operand.vmem [shape: f32[8,1], index: 3, kind: input, shape index: {}]   ;;  %s715_s4 = inlined_call_operand.hbm [shape: f32[2,8,256], index: 4, kind: output, shape index: {}]  }
   0x1   :  { %11 = vsyncpa [#allocation3 + $0x1], 0  ;;  %s592_s15 = smov 0   ;;  %s594_s16 = smov 0  }
   0x2   :  { %s596_s17 = smov 0   ;;  %s598_s18 = smov 0  }
   0x3   :  { %s600_s19 = smov 0   ;;  %s602_s20 = smov 0  }
   0x4 LB: > { %s409_s21 = sadd.s32 4294967295, %s564_s20   ;;  %s410_s22 = sadd.s32 4294967294, %s564_s20   ;;  %s564_s20 = sphi %s602_s20, %s17_s20   ;;  %s560_s19 = sphi %s600_s19, %s722_s19   ;;  %s556_s18 = sphi %s598_s18, %s721_s18   ;;  %s552_s17 = sphi %s596_s17, %s720_s17   ;;  %s548_s16 = sphi %s594_s16, %s719_s16   ;;  %s544_s15 = sphi %s592_s15, %s718_s15  }
   0x5   : > { %s29_s23 = sadd.s32 1, %s560_s19  ;;  %s129_s24 = sadd.s32 1, %s552_s17 }
   0x6   : > { %p31_p0 = scmp.ge.s32.totalorder %s29_s23, 2  ;;  %p139_p1 = scmp.ne.s32.totalorder %s552_s17, %s548_s16 }
   0x7   : > { %p140_p2 = scmp.eq.s32.totalorder %s409_s21, 1  ;;  %p145_p3 = scmp.ne.s32.totalorder %s548_s16, %s544_s15 }
   0x8   : > { %s724_s23 = smov (%p31_p0, %s29_s23), 0  ;;  %p146_p5 = scmp.eq.s32.totalorder %s410_s22, 1 }
   0x9   : > { %p632_p4 = por %p140_p2, %p139_p1  ;;  %s124_s26 = ssub.s32 %s560_s19, %s724_s23 }
   0xa   : > { %p413_p6 = scmp.ge.s32.totalorder %s564_s20, 1  ;;  %p127_p7 = scmp.eq.s32.totalorder %s124_s26, 0 }
   0xb   : > { %p639_p8 = por %p146_p5, %p145_p3  ;;  %p186_p9 = scmp.lt.s32.totalorder %s564_s20, 3 }
   0xc   : > { %s645_s28 = scalar_select %p127_p7, %s552_s17, %s129_s24  }
   0xd   : > { %p187_p10 = pnand %p413_p6, %p186_p9 }
   0xe   : > { %p217_p11 = scmp.lt.s32.totalorder (!%p187_p10), %s556_s18, 1  ;;  %s213_s30 = sand.u32 (!%p187_p10), 1, %s548_s16  }
   0xf   : > { %190 = sbr.rel (%p187_p10) target bundleno = 161 (0xa1), region = 36  ;;  %s414_s5 = sshll.u32 (!%p187_p10), %s213_s30, 4 }
  0x10   : > { %s426_s6 = sshll.u32 (!%p187_p10), %s556_s18, 4  ;;  %s215_s10 = scalar_lea.vmem (!%p187_p10), [#allocation2], %s414_s5 }
  0x11   : > { %s328_s9 = scalar_lea.hbm (!%p187_p10), %s715_s4, %s426_s6  ;;  %s330_s11 = sshll.u32 (!%p187_p10), %s215_s10, 4  ;;  %s331_s11 = int_to_ptr.vmem [resolvable:$true] %s330_s11 }
  0x12   : > { %s332_s12 = sshll.u32 (!%p187_p10), %s328_s9, 4  ;;  %s506_s24 = scalar_lea.hbm (!%p187_p10), %s715_s4, 32  ;;  %s333_s12 = int_to_ptr.hbm [resolvable:$true] %s332_s12 }
  0x13   : > { %s500_s13 = sshra.s32 (!%p187_p10), %s333_s12, 4  ;;  %s501_s13 = int_to_ptr.hbm [resolvable:$true] %s500_s13 }
  0x14   : > { %v418_v0 = vld [vmem:[%s712_s1 + $0x10] sm:$0xff]  ;;  %v230_v1 = vld [vmem:[%s712_s1] sm:$0xff]  ;;  %v566_v2 = vmov 0   ;;  %v419_v4 = vld [vmem:[%s712_s1 + $0x18] sm:$0xff]  ;;  %s218_s21 = scalar_select %p217_p11, %s556_s18, 1 }
  0x15   : > { %484 = vset.pattern.permute.xlu1 %v566_v2  ;;  %483 = vset.pattern.permute.xlu0 %v566_v2  ;;  %v227_v3 = vld [vmem:[%s713_s2] sm:$0xff]  ;;  %v417_v5 = vld [vmem:[%s712_s1 + $0x8] sm:$0xff]  ;;  %s315_s18 = scalar_lea.sflag [#allocation3], %s213_s30  ;;  %s502_s14 = scalar_lea.hbm %s501_s13, 16 }
  0x16   : > { %268 = vperm.xlu1 %484, %v418_v0   ;;  %233 = vperm.xlu0 %483, %v230_v1   ;;  %v228_v6 = vld [vmem:[%s714_s3] sm:$0xff]  ;;  %s425_s22 = sshll.u32 %s218_s21, 3  ;;  %p503_p12 = scmp.ne.s32.totalorder %s501_s13, %s502_s14 }
  0x17   : > { %485 = vset.pattern.permute.xlu2 %v566_v2  ;;  %s224_s29 = scalar_lea.vmem %s711_s0, %s425_s22  ;;  %p507_p1 = scmp.lt.s32.totalorder %s501_s13, %s715_s4 }
  0x18   : > { %300 = vperm.xlu2 %485, %v227_v3   ;;  %v229_v7 = vld [vmem:[%s224_s29] sm:$0xff]  ;;  %p504_p13 = pnand %p503_p12, %p632_p4  ;;  %p508_p2 = scmp.lt.s32.totalorder %s506_s24, %s502_s14 }
  0x19   : > { %v237_v10 = vperm.slane %v229_v7, 0  ;;  %v238_v11 = vperm.slane %v229_v7, 4  ;;  %v254_v12 = vperm.slane %v229_v7, 1  ;;  %v255_v13 = vperm.slane %v229_v7, 5 }
  0x1a   : > { %v271_v14 = vperm.slane %v229_v7, 2  ;;  %v272_v15 = vperm.slane %v229_v7, 6  ;;  %v288_v16 = vperm.slane %v229_v7, 3  ;;  %v289_v17 = vperm.slane %v229_v7, 7  ;;  %p505_p0 = pneg %p504_p13  ;;  %p509_p3 = por %p508_p2, %p507_p1 }
  0x1b   : > { %v241_v18 = vperm.slane %v237_v10, 0  ;;  %v242_v19 = vperm.slane %v238_v11, 0  ;;  %v258_v20 = vperm.slane %v254_v12, 1  ;;  %v259_v21 = vperm.slane %v255_v13, 1 }
  0x1c   : > { %v275_v22 = vperm.slane %v271_v14, 2  ;;  %v276_v23 = vperm.slane %v272_v15, 2  ;;  %v292_v25 = vperm.slane %v288_v16, 3  ;;  %v293_v26 = vperm.slane %v289_v17, 3  ;;  %p510_p5 = pnand %p509_p3, %p505_p0 }
  0x1e   : > { %285 = vperm.xlu1 %484, %v419_v4   ;;  %251 = vperm.xlu0 %483, %v417_v5  }
  0x20   : > { %307 = vperm.xlu2 %485, %v228_v6  }
  0x72   : > { %v301_v24 = vpop.permute.xlu2 %300 }
  0x7a   : > { %v308_v45 = vpop.permute.xlu2 %307 }
  0x88   : > { %v269_v8 = vpop.permute.xlu1 %268  ;;  %v234_v9 = vpop.permute.xlu0 %233 }
  0x89   : > { %v243_v28 = vmul.f32 %v241_v18, %v234_v9  ;;  %v244_v29 = vmul.f32 %v242_v19, %v234_v9  ;;  %v277_v33 = vmul.f32 %v275_v22, %v269_v8  ;;  %v278_v34 = vmul.f32 %v276_v23, %v269_v8 }
  0x90   : > { %v252_v27 = vpop.permute.xlu0 %251  ;;  %v286_v32 = vpop.permute.xlu1 %285 }
  0x91   : > { %v260_v30 = vmul.f32 %v258_v20, %v252_v27  ;;  %v261_v31 = vmul.f32 %v259_v21, %v252_v27  ;;  %v294_v37 = vmul.f32 %v292_v25, %v286_v32  ;;  %v295_v38 = vmul.f32 %v293_v26, %v286_v32 }
  0x93   : > { %v262_v35 = vadd.f32 %v260_v30, %v243_v28  ;;  %v263_v36 = vadd.f32 %v261_v31, %v244_v29 }
  0x95   : > { %v279_v39 = vadd.f32 %v277_v33, %v262_v35  ;;  %v280_v40 = vadd.f32 %v278_v34, %v263_v36 }
  0x97   : > { %v296_v41 = vadd.f32 %v294_v37, %v279_v39  ;;  %v297_v42 = vadd.f32 %v295_v38, %v280_v40 }
  0x99   : > { %v303_v43 = vmul.f32 %v301_v24, %v296_v41  ;;  %v304_v44 = vmul.f32 %v301_v24, %v297_v42 }
  0x9b   : > { %v310_v46 = vadd.f32 %v308_v45, %v303_v43  ;;  %v311_v47 = vadd.f32 %v308_v45, %v304_v44 }
  0x9d   : > { %312 = vst [vmem:[%s215_s10] sm:$0xff] %v310_v46 }
  0x9e   : > { %313 = vst [vmem:[%s215_s10 + $0x8] sm:$0xff] %v311_v47 }
  0x9f   : > { %513 = shalt.err (!%p510_p5)
}
  0xa0   : > { %427 = dma.vmem_to_hbm [thread:$0]  (%p632_p4), %s331_s11, 256, %s333_s12, %s315_s18  }
  0xa1 PF: > { %p433_p6 = scmp.ge.s32.totalorder %s564_s20, 2  ;;  %s344_s30 = sand.u32 1, %s544_s15  }
  0xa2   : > { %s345_s5 = scalar_lea.sflag [#allocation3], %s344_s30 }
  0xa3   : > { %p430_p7 = pnand %p433_p6, %p639_p8 }
  0xa5   : > { %p431_p9 = pneg %p430_p7 }
  0xa7   : > { %539 = dma.done.wait (%p431_p9), %s345_s5, 256  }
  0xa8   : > { %541 = vsyncadd (%p431_p9), %s345_s5, 4294967040  ;;  %s17_s20 = sadd.s32 1, %s564_s20   ;;  %s718_s15 = smov %s548_s16 }
  0xa9   : > { %p14_p10 = scmp.ge.s32.totalorder %s17_s20, 4   ;;  %s719_s16 = smov %s552_s17 }
  0xaa   : > { %s720_s17 = smov %s645_s28  ;;  %s721_s18 = smov %s560_s19 }
  0xab   : > { %s722_s19 = smov %s724_s23  ;;  %16 = sbr.rel (!%p14_p10) target bundleno = 4 (0x4), region = 74 }
  0xb0   :  { %351 = vsyncpa [#allocation3], 1 }
  0xb1   :  { %353 = vsyncpa [#allocation3 + $0x1], 1 }

</bundles_post_ra>
